<compile_context>
chip_gen: v5e
topology: v5e:2x2
jax: 0.10.0
libtpu: 0.0.40
codegen_flags: <defaults>
</compile_context>

<pallas_src>
import math
import functools

import jax
import jax.numpy as jnp
from jax.experimental import pallas as pl
from jax.experimental.pallas import tpu as pltpu


# ----------------------------- fused Pallas kernel ---------------------------

def _gnn_fused_kernel(x_ref, te_ref, a_ref, edge_ref, w_ref, t1_ref, cb_ref,
                      h0_ref, hL_ref, logits_ref,
                      *, in_ch, hidden, num_layers, out_ch):
    f32 = jnp.float32
    H, L = hidden, num_layers
    n = a_ref.shape[0]            # num nodes  (static)
    e = edge_ref.shape[1]         # num decoder edges (static)

    # Static row offsets inside the packed (rows, 32) weight slab.
    o_in = 0                      # w_in                (in_ch, H)
    o_t2 = o_in + in_ch           # w_t2                (4H, H)
    o_cv = o_t2 + 4 * H           # conv_w[i]           (L*H, H)
    o_e1s = o_cv + L * H          # w_e1[:H].T          (H, H)
    o_e1d = o_e1s + H             # w_e1[H:].T          (H, H)
    o_e2 = o_e1d + H              # w_e2.T              (out_ch, H)
    o_b = o_e2 + out_ch           # bias rows: [b_in + b_t2, conv_b_0, ..., conv_b_{L-1}]

    # --- time MLP: Linear -> SiLU -> Linear (b_t2 is folded into the b_in row) ---
    t = (jnp.dot(te_ref[...], t1_ref[0:H, :], preferred_element_type=f32)
         + t1_ref[H:H + 1, :])                                   # (N, 4H)
    t = t * jax.nn.sigmoid(t)                                    # SiLU
    t = jnp.dot(t, w_ref[o_t2:o_t2 + 4 * H, :], preferred_element_type=f32)

    # --- input transform + time embedding, single fused add chain ---
    h = (jnp.dot(x_ref[...], w_ref[o_in:o_in + in_ch, :], preferred_element_type=f32)
         + t + w_ref[o_b:o_b + 1, :])                            # (N, H)
    h0_ref[...] = h                                              # h_list[0]

    # --- GCN layers: h = A_hat @ (h @ W) + b ; ReLU on all but last (norm=None) ---
    a = a_ref[...]
    for i in range(L):
        hw = jnp.dot(h, w_ref[o_cv + i * H:o_cv + (i + 1) * H, :],
                     preferred_element_type=f32)
        h = (jnp.dot(a, hw, preferred_element_type=f32)
             + w_ref[o_b + 1 + i:o_b + 2 + i, :])
        if i < L - 1:
            h = jnp.maximum(h, 0.0)
    hL_ref[...] = h                                              # h_list[1]

    # --- edge head in lane-dense transposed layout (H rows, E lanes) ---
    # z[e] = h[src[e]] @ W_src + h[dst[e]] @ W_dst + b_e1 ; logits = silu(z) @ w_e2 + b_e2
    hT = h.T                                                     # (H, N)
    psT = (jnp.dot(w_ref[o_e1s:o_e1s + H, :], hT, preferred_element_type=f32)
           + cb_ref[0:H, :])                                     # (H, N), b_e1 folded
    pdT = jnp.dot(w_ref[o_e1d:o_e1d + H, :], hT, preferred_element_type=f32)

    # Per-edge gather via selection matrices built in-kernel (no (E, N) HBM one-hots).
    node_iota = jax.lax.broadcasted_iota(jnp.int32, (n, e), 0)   # (N, E)
    sel_src = jnp.where(edge_ref[0:1, :] == node_iota, 1.0, 0.0)  # (N, E)
    sel_dst = jnp.where(edge_ref[1:2, :] == node_iota, 1.0, 0.0)  # (N, E)

    zT = (jnp.dot(psT, sel_src, preferred_element_type=f32)
          + jnp.dot(pdT, sel_dst, preferred_element_type=f32))   # (H, E)
    zT = zT * jax.nn.sigmoid(zT)                                 # SiLU on full vregs

    logits_ref[...] = (jnp.dot(w_ref[o_e2:o_e2 + out_ch, :], zT,
                               preferred_element_type=f32)
                       + cb_ref[H:H + out_ch, :])                # (out_ch, E)


# ------------------------------- JAX glue ------------------------------------

def sinusoidal_pos_emb(t, dim, num_steps, rescale_steps=4000.0):
    # SinusoidalPosEmb(dim, num_timesteps): rescaled sinusoidal embedding
    # (non-learned, tiny -> kept in the wrapper, no in-kernel sin/cos needed).
    t = t.astype(jnp.float32) / float(num_steps) * rescale_steps
    half = dim // 2
    freqs = jnp.exp(jnp.arange(half, dtype=jnp.float32)
                    * -(math.log(10000.0) / (half - 1)))
    args = t[:, None] * freqs[None, :]
    return jnp.concatenate([jnp.sin(args), jnp.cos(args)], axis=-1)


def normalized_adjacency(edge_index, num_nodes):
    # GCNConv default: add self loops, symmetric D^{-1/2} (A+I) D^{-1/2}.
    # NOTE: adds I unconditionally (fine for edge lists without explicit self loops).
    src, dst = edge_index[0], edge_index[1]
    a = jnp.zeros((num_nodes, num_nodes), jnp.float32).at[dst, src].set(1.0)
    a = a + jnp.eye(num_nodes, dtype=jnp.float32)
    deg = a.sum(axis=1)
    dinv = 1.0 / jnp.sqrt(deg)
    return a * dinv[:, None] * dinv[None, :]


def init_params(key, in_channels, hidden, out_channels, num_layers):
    keys = jax.random.split(key, 5 + num_layers)

    def dense(k, i, o):
        return 0.1 * jax.random.normal(k, (i, o), jnp.float32)

    return {
        "w_in": dense(keys[0], in_channels, hidden),
        "b_in": jnp.zeros((hidden,), jnp.float32),
        "w_t1": dense(keys[1], hidden, 4 * hidden),
        "b_t1": jnp.zeros((4 * hidden,), jnp.float32),
        "w_t2": dense(keys[2], 4 * hidden, hidden),
        "b_t2": jnp.zeros((hidden,), jnp.float32),
        "conv_w": [dense(keys[3 + i], hidden, hidden) for i in range(num_layers)],
        "conv_b": [jnp.zeros((hidden,), jnp.float32) for _ in range(num_layers)],
        "w_e1": dense(keys[3 + num_layers], 2 * hidden, hidden),
        "b_e1": jnp.zeros((hidden,), jnp.float32),
        "w_e2": dense(keys[4 + num_layers], hidden, out_channels),
        "b_e2": jnp.zeros((out_channels,), jnp.float32),
    }


def pack_params(params, in_channels, hidden, out_channels, num_layers):
    """Pack every learned tensor into 3 VMEM-friendly slabs (done once, outside jit)."""
    H = hidden
    w_e1 = params["w_e1"]
    w_slab = jnp.concatenate(
        [params["w_in"],                                   # (in_ch, H)
         params["w_t2"],                                   # (4H, H)
         jnp.concatenate(params["conv_w"], axis=0),        # (L*H, H)
         w_e1[:H].T,                                       # (H, H)  src half, transposed
         w_e1[H:].T,                                       # (H, H)  dst half, transposed
         params["w_e2"].T,                                 # (out, H)
         (params["b_in"] + params["b_t2"]).reshape(1, H),  # folded input/time bias
         jnp.stack(params["conv_b"])],                     # (L, H)
        axis=0)
    w_t1b = jnp.concatenate(
        [params["w_t1"], params["b_t1"].reshape(1, 4 * H)], axis=0)      # (H+1, 4H)
    col_b = jnp.concatenate(
        [params["b_e1"].reshape(H, 1),
         params["b_e2"].reshape(out_channels, 1)], axis=0)               # (H+out, 1)
    return {"w_slab": w_slab, "w_t1b": w_t1b, "col_b": col_b}


def gnn_forward(packed, x, time_steps, a_norm, edge_idx, *,
                in_channels, hidden, out_channels, num_layers, num_timesteps=128):
    # TODO(synk): training-mode dropout (p=0.5) omitted; eval-mode forward only.
    n = x.shape[0]
    e = edge_idx.shape[1]

    te = sinusoidal_pos_emb(time_steps, hidden, num_timesteps)            # (N, H)

    vmem = lambda: pl.BlockSpec(memory_space=pltpu.MemorySpace.VMEM)
    kernel = functools.partial(_gnn_fused_kernel, in_ch=in_channels, hidden=hidden,
                               num_layers=num_layers, out_ch=out_channels)

    h0, h_last, logits_t = pl.pallas_call(
        kernel,
        out_shape=(jax.ShapeDtypeStruct((n, hidden), jnp.float32),
                   jax.ShapeDtypeStruct((n, hidden), jnp.float32),
                   jax.ShapeDtypeStruct((out_channels, e), jnp.float32)),
        in_specs=[vmem() for _ in range(7)],
        out_specs=(vmem(), vmem(), vmem()),
    )(x, te, a_norm, edge_idx, packed["w_slab"], packed["w_t1b"], packed["col_b"])

    edge_logits = logits_t.T        # back to (E, out_ch); lane-dense stores stay in-kernel
    return edge_logits, [h0, h_last]


# -------------------------- pure-JAX reference (check) ------------------------

def gnn_reference(params, x, time_steps, a_norm, edge_idx, *,
                  hidden, num_timesteps, num_layers):
    te = sinusoidal_pos_emb(time_steps, hidden, num_timesteps)
    t = te @ params["w_t1"] + params["b_t1"]
    t = t * jax.nn.sigmoid(t)
    t = t @ params["w_t2"] + params["b_t2"]
    h = x @ params["w_in"] + params["b_in"] + t
    h0 = h
    for i in range(num_layers):
        h = a_norm @ (h @ params["conv_w"][i]) + params["conv_b"][i]
        if i < num_layers - 1:
            h = jnp.maximum(h, 0.0)
    src, dst = edge_idx[0], edge_idx[1]
    z = jnp.concatenate([h[src], h[dst]], axis=1) @ params["w_e1"] + params["b_e1"]
    z = z * jax.nn.sigmoid(z)
    logits = z @ params["w_e2"] + params["b_e2"]
    return logits, [h0, h]


# ---------------------------------- main --------------------------------------

if __name__ == "__main__":
    N = 16            # num nodes
    IN_CH = 8         # in_channels
    HID = 32          # hidden_channels
    OUT_CH = 1        # out_channels
    NUM_LAYERS = 2
    NUM_TIMESTEPS = 128

    key = jax.random.PRNGKey(0)
    k_x, k_t, k_p = jax.random.split(key, 3)

    # node features and per-node diffusion timestep
    x = jax.random.normal(k_x, (N, IN_CH), jnp.float32)
    time_steps = jax.random.randint(k_t, (N,), 0, NUM_TIMESTEPS).astype(jnp.float32)

    # message-passing graph: bidirectional ring
    fwd_edges = jnp.stack([jnp.arange(N), (jnp.arange(N) + 1) % N])
    edge_index = jnp.concatenate([fwd_edges, fwd_edges[::-1]], axis=1)    # [2, 2N]
    a_norm = normalized_adjacency(edge_index, N)

    # full_edge_index: all ordered node pairs (decoder edges), E = N*N
    ii, jj = jnp.meshgrid(jnp.arange(N), jnp.arange(N), indexing="ij")
    full_edge_index = jnp.stack([ii.reshape(-1), jj.reshape(-1)]).astype(jnp.int32)

    params = init_params(k_p, IN_CH, HID, OUT_CH, NUM_LAYERS)
    packed = pack_params(params, IN_CH, HID, OUT_CH, NUM_LAYERS)

    fwd = jax.jit(functools.partial(gnn_forward, in_channels=IN_CH, hidden=HID,
                                    out_channels=OUT_CH, num_layers=NUM_LAYERS,
                                    num_timesteps=NUM_TIMESTEPS))
    edge_logits, h_list = fwd(packed, x, time_steps, a_norm, full_edge_index)
    jax.block_until_ready(edge_logits)
    jax.block_until_ready(h_list)

    # shape / sanity checks
    assert edge_logits.shape == (N * N, OUT_CH)
    assert h_list[0].shape == (N, HID) and h_list[1].shape == (N, HID)
    assert bool(jnp.isfinite(edge_logits).all())
    assert bool(jnp.isfinite(h_list[0]).all()) and bool(jnp.isfinite(h_list[1]).all())

    # numeric check against the pure-JAX reference (generous tol for MXU precision)
    ref_logits, ref_h = gnn_reference(params, x, time_steps, a_norm, full_edge_index,
                                      hidden=HID, num_timesteps=NUM_TIMESTEPS,
                                      num_layers=NUM_LAYERS)
    err = max(float(jnp.max(jnp.abs(edge_logits - ref_logits))),
              float(jnp.max(jnp.abs(h_list[0] - ref_h[0]))),
              float(jnp.max(jnp.abs(h_list[1] - ref_h[1]))))
    assert err < 2e-2, f"mismatch vs reference: {err}"

    print("KERNEL_OK")
</pallas_src>

<mosaic_0001>
module attributes {stable_mosaic.version = 11 : i64} {
  func.func @_gnn_fused_kernel(%arg0: memref<16x8xf32, #tpu.memory_space<vmem>>, %arg1: memref<16x32xf32, #tpu.memory_space<vmem>>, %arg2: memref<16x16xf32, #tpu.memory_space<vmem>>, %arg3: memref<2x256xi32, #tpu.memory_space<vmem>>, %arg4: memref<268x32xf32, #tpu.memory_space<vmem>>, %arg5: memref<33x128xf32, #tpu.memory_space<vmem>>, %arg6: memref<33x1xf32, #tpu.memory_space<vmem>>, %arg7: memref<16x32xf32, #tpu.memory_space<vmem>>, %arg8: memref<16x32xf32, #tpu.memory_space<vmem>>, %arg9: memref<1x256xf32, #tpu.memory_space<vmem>>) attributes {dimension_semantics = [], scalar_prefetch = 0 : i64, scratch_operands = 0 : i64, tpu.core_type = #tpu.core_type<tc>} {
    %c0 = arith.constant 0 : index
    %c0_0 = arith.constant 0 : index
    %0 = vector.load %arg1[%c0, %c0_0] : memref<16x32xf32, #tpu.memory_space<vmem>>, vector<16x32xf32>
    %c0_1 = arith.constant 0 : index
    %c0_2 = arith.constant 0 : index
    %1 = vector.load %arg5[%c0_1, %c0_2] : memref<33x128xf32, #tpu.memory_space<vmem>>, vector<32x128xf32>
    %cst = arith.constant dense<0.000000e+00> : vector<16x128xf32>
    %2 = tpu.matmul %0, %1, %cst {dimension_numbers = #tpu.dot_dimension_numbers<[1], [0], [0], [1], [0, 0, 1, 1], [], []>} : vector<16x32xf32>, vector<32x128xf32>, vector<16x128xf32> -> vector<16x128xf32>
    %c32 = arith.constant 32 : index
    %c0_3 = arith.constant 0 : index
    %3 = vector.load %arg5[%c32, %c0_3] : memref<33x128xf32, #tpu.memory_space<vmem>>, vector<1x128xf32>
    %4 = vector.broadcast %3 : vector<1x128xf32> to vector<16x128xf32>
    %5 = arith.addf %2, %4 : vector<16x128xf32>
    %6 = arith.negf %5 : vector<16x128xf32>
    %7 = math.exp %6 : vector<16x128xf32>
    %cst_4 = arith.constant 1.000000e+00 : f32
    %8 = vector.broadcast %cst_4 : f32 to vector<16x128xf32>
    %9 = arith.addf %8, %7 : vector<16x128xf32>
    %10 = arith.divf %8, %9 : vector<16x128xf32>
    %11 = arith.mulf %5, %10 : vector<16x128xf32>
    %c8 = arith.constant 8 : index
    %c0_5 = arith.constant 0 : index
    %12 = vector.load %arg4[%c8, %c0_5] : memref<268x32xf32, #tpu.memory_space<vmem>>, vector<128x32xf32>
    %cst_6 = arith.constant dense<0.000000e+00> : vector<16x32xf32>
    %13 = tpu.matmul %11, %12, %cst_6 {dimension_numbers = #tpu.dot_dimension_numbers<[1], [0], [0], [1], [0, 0, 1, 1], [], []>} : vector<16x128xf32>, vector<128x32xf32>, vector<16x32xf32> -> vector<16x32xf32>
    %c0_7 = arith.constant 0 : index
    %c0_8 = arith.constant 0 : index
    %14 = vector.load %arg0[%c0_7, %c0_8] : memref<16x8xf32, #tpu.memory_space<vmem>>, vector<16x8xf32>
    %c0_9 = arith.constant 0 : index
    %c0_10 = arith.constant 0 : index
    %15 = vector.load %arg4[%c0_9, %c0_10] : memref<268x32xf32, #tpu.memory_space<vmem>>, vector<8x32xf32>
    %cst_11 = arith.constant dense<0.000000e+00> : vector<16x32xf32>
    %16 = tpu.matmul %14, %15, %cst_11 {dimension_numbers = #tpu.dot_dimension_numbers<[1], [0], [0], [1], [0, 0, 1, 1], [], []>} : vector<16x8xf32>, vector<8x32xf32>, vector<16x32xf32> -> vector<16x32xf32>
    %17 = arith.addf %16, %13 : vector<16x32xf32>
    %c265 = arith.constant 265 : index
    %c0_12 = arith.constant 0 : index
    %18 = vector.load %arg4[%c265, %c0_12] : memref<268x32xf32, #tpu.memory_space<vmem>>, vector<1x32xf32>
    %19 = vector.broadcast %18 : vector<1x32xf32> to vector<16x32xf32>
    %20 = arith.addf %17, %19 : vector<16x32xf32>
    %c0_13 = arith.constant 0 : index
    %c0_14 = arith.constant 0 : index
    %21 = vector.load %arg7[%c0_13, %c0_14] : memref<16x32xf32, #tpu.memory_space<vmem>>, vector<16x32xf32>
    tpu.vector_store %arg7[%c0_13, %c0_14], %20 {strides = array<i32>} : memref<16x32xf32, #tpu.memory_space<vmem>>, vector<16x32xf32>,
    %c0_15 = arith.constant 0 : index
    %c0_16 = arith.constant 0 : index
    %22 = vector.load %arg2[%c0_15, %c0_16] : memref<16x16xf32, #tpu.memory_space<vmem>>, vector<16x16xf32>
    %c136 = arith.constant 136 : index
    %c0_17 = arith.constant 0 : index
    %23 = vector.load %arg4[%c136, %c0_17] : memref<268x32xf32, #tpu.memory_space<vmem>>, vector<32x32xf32>
    %cst_18 = arith.constant dense<0.000000e+00> : vector<16x32xf32>
    %24 = tpu.matmul %20, %23, %cst_18 {dimension_numbers = #tpu.dot_dimension_numbers<[1], [0], [0], [1], [0, 0, 1, 1], [], []>} : vector<16x32xf32>, vector<32x32xf32>, vector<16x32xf32> -> vector<16x32xf32>
    %cst_19 = arith.constant dense<0.000000e+00> : vector<16x32xf32>
    %25 = tpu.matmul %22, %24, %cst_19 {dimension_numbers = #tpu.dot_dimension_numbers<[1], [0], [0], [1], [0, 0, 1, 1], [], []>} : vector<16x16xf32>, vector<16x32xf32>, vector<16x32xf32> -> vector<16x32xf32>
    %c266 = arith.constant 266 : index
    %c0_20 = arith.constant 0 : index
    %26 = vector.load %arg4[%c266, %c0_20] : memref<268x32xf32, #tpu.memory_space<vmem>>, vector<1x32xf32>
    %27 = vector.broadcast %26 : vector<1x32xf32> to vector<16x32xf32>
    %28 = arith.addf %25, %27 : vector<16x32xf32>
    %cst_21 = arith.constant 0.000000e+00 : f32
    %29 = vector.broadcast %cst_21 : f32 to vector<16x32xf32>
    %30 = arith.maximumf %28, %29 : vector<16x32xf32>
    %c168 = arith.constant 168 : index
    %c0_22 = arith.constant 0 : index
    %31 = vector.load %arg4[%c168, %c0_22] : memref<268x32xf32, #tpu.memory_space<vmem>>, vector<32x32xf32>
    %cst_23 = arith.constant dense<0.000000e+00> : vector<16x32xf32>
    %32 = tpu.matmul %30, %31, %cst_23 {dimension_numbers = #tpu.dot_dimension_numbers<[1], [0], [0], [1], [0, 0, 1, 1], [], []>} : vector<16x32xf32>, vector<32x32xf32>, vector<16x32xf32> -> vector<16x32xf32>
    %cst_24 = arith.constant dense<0.000000e+00> : vector<16x32xf32>
    %33 = tpu.matmul %22, %32, %cst_24 {dimension_numbers = #tpu.dot_dimension_numbers<[1], [0], [0], [1], [0, 0, 1, 1], [], []>} : vector<16x16xf32>, vector<16x32xf32>, vector<16x32xf32> -> vector<16x32xf32>
    %c267 = arith.constant 267 : index
    %c0_25 = arith.constant 0 : index
    %34 = vector.load %arg4[%c267, %c0_25] : memref<268x32xf32, #tpu.memory_space<vmem>>, vector<1x32xf32>
    %35 = vector.broadcast %34 : vector<1x32xf32> to vector<16x32xf32>
    %36 = arith.addf %33, %35 : vector<16x32xf32>
    %c0_26 = arith.constant 0 : index
    %c0_27 = arith.constant 0 : index
    %37 = vector.load %arg8[%c0_26, %c0_27] : memref<16x32xf32, #tpu.memory_space<vmem>>, vector<16x32xf32>
    tpu.vector_store %arg8[%c0_26, %c0_27], %36 {strides = array<i32>} : memref<16x32xf32, #tpu.memory_space<vmem>>, vector<16x32xf32>,
    %38 = tpu.transpose %36, [1, 0] : vector<16x32xf32> -> vector<32x16xf32>
    %c200 = arith.constant 200 : index
    %c0_28 = arith.constant 0 : index
    %39 = vector.load %arg4[%c200, %c0_28] : memref<268x32xf32, #tpu.memory_space<vmem>>, vector<32x32xf32>
    %cst_29 = arith.constant dense<0.000000e+00> : vector<32x16xf32>
    %40 = tpu.matmul %39, %38, %cst_29 {dimension_numbers = #tpu.dot_dimension_numbers<[1], [0], [0], [1], [0, 0, 1, 1], [], []>} : vector<32x32xf32>, vector<32x16xf32>, vector<32x16xf32> -> vector<32x16xf32>
    %c0_30 = arith.constant 0 : index
    %c0_31 = arith.constant 0 : index
    %41 = vector.load %arg6[%c0_30, %c0_31] : memref<33x1xf32, #tpu.memory_space<vmem>>, vector<32x1xf32>
    %42 = vector.broadcast %41 : vector<32x1xf32> to vector<32x16xf32>
    %43 = arith.addf %40, %42 : vector<32x16xf32>
    %c232 = arith.constant 232 : index
    %c0_32 = arith.constant 0 : index
    %44 = vector.load %arg4[%c232, %c0_32] : memref<268x32xf32, #tpu.memory_space<vmem>>, vector<32x32xf32>
    %cst_33 = arith.constant dense<0.000000e+00> : vector<32x16xf32>
    %45 = tpu.matmul %44, %38, %cst_33 {dimension_numbers = #tpu.dot_dimension_numbers<[1], [0], [0], [1], [0, 0, 1, 1], [], []>} : vector<32x32xf32>, vector<32x16xf32>, vector<32x16xf32> -> vector<32x16xf32>
    %46 = tpu.iota {dimensions = array<i32: 0>} : vector<16x256xi32>
    %c0_34 = arith.constant 0 : index
    %c0_35 = arith.constant 0 : index
    %47 = vector.load %arg3[%c0_34, %c0_35] : memref<2x256xi32, #tpu.memory_space<vmem>>, vector<1x256xi32>
    %48 = vector.broadcast %47 : vector<1x256xi32> to vector<16x256xi32>
    %49 = arith.cmpi eq, %48, %46 : vector<16x256xi32>
    %cst_36 = arith.constant 1.000000e+00 : f32
    %cst_37 = arith.constant 0.000000e+00 : f32
    %50 = vector.broadcast %cst_36 : f32 to vector<16x256xf32>
    %51 = vector.broadcast %cst_37 : f32 to vector<16x256xf32>
    %52 = arith.select %49, %50, %51 : vector<16x256xi1>, vector<16x256xf32>
    %c1 = arith.constant 1 : index
    %c0_38 = arith.constant 0 : index
    %53 = vector.load %arg3[%c1, %c0_38] : memref<2x256xi32, #tpu.memory_space<vmem>>, vector<1x256xi32>
    %54 = vector.broadcast %53 : vector<1x256xi32> to vector<16x256xi32>
    %55 = arith.cmpi eq, %54, %46 : vector<16x256xi32>
    %cst_39 = arith.constant 1.000000e+00 : f32
    %cst_40 = arith.constant 0.000000e+00 : f32
    %56 = vector.broadcast %cst_39 : f32 to vector<16x256xf32>
    %57 = vector.broadcast %cst_40 : f32 to vector<16x256xf32>
    %58 = arith.select %55, %56, %57 : vector<16x256xi1>, vector<16x256xf32>
    %cst_41 = arith.constant dense<0.000000e+00> : vector<32x256xf32>
    %59 = tpu.matmul %43, %52, %cst_41 {dimension_numbers = #tpu.dot_dimension_numbers<[1], [0], [0], [1], [0, 0, 1, 1], [], []>} : vector<32x16xf32>, vector<16x256xf32>, vector<32x256xf32> -> vector<32x256xf32>
    %cst_42 = arith.constant dense<0.000000e+00> : vector<32x256xf32>
    %60 = tpu.matmul %45, %58, %cst_42 {dimension_numbers = #tpu.dot_dimension_numbers<[1], [0], [0], [1], [0, 0, 1, 1], [], []>} : vector<32x16xf32>, vector<16x256xf32>, vector<32x256xf32> -> vector<32x256xf32>
    %61 = arith.addf %59, %60 : vector<32x256xf32>
    %62 = arith.negf %61 : vector<32x256xf32>
    %63 = math.exp %62 : vector<32x256xf32>
    %cst_43 = arith.constant 1.000000e+00 : f32
    %64 = vector.broadcast %cst_43 : f32 to vector<32x256xf32>
    %65 = arith.addf %64, %63 : vector<32x256xf32>
    %66 = arith.divf %64, %65 : vector<32x256xf32>
    %67 = arith.mulf %61, %66 : vector<32x256xf32>
    %c264 = arith.constant 264 : index
    %c0_44 = arith.constant 0 : index
    %68 = vector.load %arg4[%c264, %c0_44] : memref<268x32xf32, #tpu.memory_space<vmem>>, vector<1x32xf32>
    %cst_45 = arith.constant dense<0.000000e+00> : vector<1x256xf32>
    %69 = tpu.matmul %68, %67, %cst_45 {dimension_numbers = #tpu.dot_dimension_numbers<[1], [0], [0], [1], [0, 0, 1, 1], [], []>} : vector<1x32xf32>, vector<32x256xf32>, vector<1x256xf32> -> vector<1x256xf32>
    %c32_46 = arith.constant 32 : index
    %c0_47 = arith.constant 0 : index
    %70 = vector.load %arg6[%c32_46, %c0_47] : memref<33x1xf32, #tpu.memory_space<vmem>>, vector<1x1xf32>
    %71 = vector.broadcast %70 : vector<1x1xf32> to vector<1x256xf32>
    %72 = arith.addf %69, %71 : vector<1x256xf32>
    %c0_48 = arith.constant 0 : index
    %c0_49 = arith.constant 0 : index
    %73 = vector.load %arg9[%c0_48, %c0_49] : memref<1x256xf32, #tpu.memory_space<vmem>>, vector<1x256xf32>
    tpu.vector_store %arg9[%c0_48, %c0_49], %72 {strides = array<i32>} : memref<1x256xf32, #tpu.memory_space<vmem>>, vector<1x256xf32>,
    return
  }
}

</mosaic_0001>

<bundles_post_ra>
// kernel: gnn_forward.1
= control target key start
LH: loop header
LB: loop body
LE: loop exit
PB: predicated region body
PF: predicated region fallthrough
CT: control target
= control target key end

     0   :  { %15 = vsyncpa [#allocation3], 0  ;;  %s1565_s0 = inlined_call_operand.vmem [shape: f32[16,8], index: 0, kind: input, shape index: {}]   ;;  %s1566_s1 = inlined_call_operand.vmem [shape: f32[16,32], index: 1, kind: input, shape index: {}]   ;;  %s1567_s2 = inlined_call_operand.vmem [shape: f32[16,16], index: 2, kind: input, shape index: {}]   ;;  %s1568_s3 = inlined_call_operand.vmem [shape: s32[2,256], index: 3, kind: input, shape index: {}]   ;;  %s1569_s4 = inlined_call_operand.vmem [shape: f32[268,32], index: 4, kind: input, shape index: {}]   ;;  %s1570_s5 = inlined_call_operand.vmem [shape: f32[33,128], index: 5, kind: input, shape index: {}]   ;;  %s1571_s6 = inlined_call_operand.vmem [shape: f32[33,1], index: 6, kind: input, shape index: {}]   ;;  %s1572_s7 = inlined_call_operand.hbm [shape: f32[16,32], index: 7, kind: output, shape index: {0}]   ;;  %s1573_s8 = inlined_call_operand.hbm [shape: f32[16,32], index: 8, kind: output, shape index: {1}]   ;;  %s1574_s9 = inlined_call_operand.hbm [shape: f32[1,256], index: 9, kind: output, shape index: {2}]  }
   0x1   :  { %v36_v0 = vld [vmem:[%s1570_s5 + $0x18] sm:$0xff]  ;;  %v35_v1 = vld [vmem:[%s1570_s5 + $0x10] sm:$0xff]  ;;  %v34_v2 = vld [vmem:[%s1570_s5 + $0x8] sm:$0xff] }
   0x2   :  { %58 = vmatpush.msra.mxu3 %v36_v0 }
   0x4   :  { %59 = vmatpush.msra.mxu3 %v35_v1 }
   0x5   :  { %16 = vsyncpa [#allocation5], 0  ;;  %v33_v3 = vld [vmem:[%s1570_s5] sm:$0xff]  ;;  %vm1575_vm0 = vcmask 261120   ;;  %v32_v5 = vld [vmem:[%s1566_s1 + $0x8] sm:$0xff]  ;;  %vm151_vm1 = vcmask 64512  }
   0x6   :  { %60 = vmatpush.msra.mxu3 %v34_v2  ;;  %v31_v4 = vld [vmem:[%s1566_s1] sm:$0xff]  ;;  %v123_v7 = vld [vmem:[%s1569_s4 + $0x78] sm:$0xff]  ;;  %v122_v8 = vld [vmem:[%s1569_s4 + $0x70] sm:$0xff]  ;;  %vm224_vm10 = vcmask 130048   ;;  %s842_s23 = sshll.u32 %s1573_s8, 4  ;;  %s1068_s24 = smov [#allocation4]   ;;  %s843_s23 = int_to_ptr.hbm [resolvable:$true] %s842_s23 }
   0x7   :  { %v124_v6 = vld [vmem:[%s1569_s4 + $0x80] sm:$0xff]  ;;  %v121_v9 = vld [vmem:[%s1569_s4 + $0x68] sm:$0xff]  ;;  %v119_v11 = vld [vmem:[%s1569_s4 + $0x58] sm:$0xff]  ;;  %s840_s25 = sshll.u32 %s1068_s24, 4  ;;  %s1069_s26 = smov 128   ;;  %s841_s25 = int_to_ptr.vmem [resolvable:$true] %s840_s25 }
   0x8   :  { %61 = vmatpush.msra.mxu3 %v33_v3  ;;  %125 = vmatpush.msra.mxu1 %v124_v6  ;;  %v120_v10 = vld [vmem:[%s1569_s4 + $0x60] sm:$0xff]  ;;  %v118_v12 = vld [vmem:[%s1569_s4 + $0x50] sm:$0xff]  ;;  %v117_v13 = vld [vmem:[%s1569_s4 + $0x48] sm:$0xff]  ;;  %s1070_s27 = smov 8   ;;  %s829_s30 = sshll.u32 %s1572_s7, 4  ;;  %s830_s30 = int_to_ptr.hbm [resolvable:$true] %s829_s30 }
   0x9   :  { %874 = vmatmul.msk.f32.vlgmr.msra.gmra.mxu3 %vm1575_vm0, %v31_v4  ;;  %v116_v14 = vld [vmem:[%s1569_s4 + $0x40] sm:$0xff]  ;;  %v115_v15 = vld [vmem:[%s1569_s4 + $0x38] sm:$0xff]  ;;  %v114_v16 = vld [vmem:[%s1569_s4 + $0x30] sm:$0xff]  ;;  %s1072_s8 = smov [#allocation6]   ;;  %s856_s13 = sshll.u32 %s1574_s9, 4  ;;  %s857_s13 = int_to_ptr.hbm [resolvable:$true] %s856_s13 }
   0xa   :  { %126 = vmatpush.msra.mxu1 %v123_v7  ;;  %v113_v17 = vld [vmem:[%s1569_s4 + $0x28] sm:$0xff]  ;;  %v112_v18 = vld [vmem:[%s1569_s4 + $0x20] sm:$0xff]  ;;  %v111_v20 = vld [vmem:[%s1569_s4 + $0x18] sm:$0xff]  ;;  %s854_s10 = sshll.u32 %s1072_s8, 4  ;;  %s855_s10 = int_to_ptr.vmem [resolvable:$true] %s854_s10 }
   0xb   :  { %v150_v19 = vld [vmem:[%s1569_s4] sm:$0xff]  ;;  %v110_v21 = vld [vmem:[%s1569_s4 + $0x10] sm:$0xff]  ;;  %v109_v23 = vld [vmem:[%s1569_s4 + $0x8] sm:$0xff] }
   0xc   :  { %127 = vmatpush.msra.mxu1 %v122_v8  ;;  %173 = vmatpush.msra.mxu0 %v150_v19  ;;  %v946_v22 = vld [vmem:[%s1570_s5 + $0x20] ss:$0 sm:$0xff]  ;;  %v149_v27 = vld [vmem:[%s1565_s0 + $0x8] sm:$0xff]  ;;  %v191_v59 = vld [vmem:[%s1569_s4 + $0x98] sm:$0xff] }
   0xd   :  { %935 = vmatpush.msra.mxu2 %v150_v19  ;;  %v148_v25 = vld [vmem:[%s1565_s0] sm:$0xff]  ;;  %v190_v60 = vld [vmem:[%s1569_s4 + $0x90] sm:$0xff]  ;;  %v189_v61 = vld [vmem:[%s1569_s4 + $0x88] sm:$0xff] }
   0xe   :  { %128 = vmatpush.msra.mxu1 %v121_v9  ;;  %878 = vmatmul.msk.f32.vlgmr.msra.gmra.mxu0 %vm151_vm1, %v148_v25  ;;  %v192_v31 = vld [vmem:[%s1569_s4 + $0xa0] sm:$0xff]  ;;  %v947_v63 = vld [vmem:[%s1569_s4 + $0x109] ss:$0 sm:$0xff] }
   0xf   :  { %879 = vmatmul.msk.f32.vlgmr.msra.gmra.mxu2 %vm151_vm1, %v149_v27  ;;  %211 = vmatpush.msrb.mxu3 %v192_v31  ;;  %v259_v7 = vld [vmem:[%s1569_s4 + $0xc0] sm:$0xff] }
  0x10   :  { %129 = vmatpush.msra.mxu1 %v120_v10  ;;  %278 = vmatpush.msrb.mxu0 %v259_v7  ;;  %v187_v10 = vld [vmem:[%s1567_s2] sm:$0xff] }
  0x11   :  { %875 = vmatmul.msk.f32.gmra.mxu3 %vm1575_vm0, %v32_v5  ;;  %v320_v25 = vld [vmem:[%s1571_s6] sm:$0xff] }
  0x12   :  { %130 = vmatpush.msra.mxu1 %v119_v11  ;;  %212 = vmatpush.msrb.mxu3 %v191_v59  ;;  %v188_v11 = vld [vmem:[%s1567_s2 + $0x8] sm:$0xff] }
  0x14   :  { %131 = vmatpush.msra.mxu1 %v118_v12  ;;  %213 = vmatpush.msrb.mxu3 %v190_v60  ;;  %v258_v12 = vld [vmem:[%s1569_s4 + $0xb8] sm:$0xff] }
  0x15   :  { %279 = vmatpush.msrb.mxu0 %v258_v12 }
  0x16   :  { %132 = vmatpush.msra.mxu1 %v117_v13  ;;  %214 = vmatpush.msrb.mxu3 %v189_v61  ;;  %v257_v13 = vld [vmem:[%s1569_s4 + $0xb0] sm:$0xff] }
  0x17   :  { %280 = vmatpush.msrb.mxu0 %v257_v13 }
  0x18   :  { %133 = vmatpush.msra.mxu1 %v116_v14  ;;  %v256_v14 = vld [vmem:[%s1569_s4 + $0xa8] sm:$0xff] }
  0x19   :  { %281 = vmatpush.msrb.mxu0 %v256_v14 }
  0x1a   :  { %134 = vmatpush.msra.mxu1 %v115_v15  ;;  %v948_v15 = vld [vmem:[%s1569_s4 + $0x10a] ss:$0 sm:$0xff] }
  0x1c   :  { %135 = vmatpush.msra.mxu1 %v114_v16 }
  0x1e   :  { %136 = vmatpush.msra.mxu1 %v113_v17 }
  0x20   :  { %137 = vmatpush.msra.mxu1 %v112_v18 }
  0x22   :  { %138 = vmatpush.msra.mxu1 %v111_v20 }
  0x24   :  { %139 = vmatpush.msra.mxu1 %v110_v21 }
  0x26   :  { %140 = vmatpush.msra.mxu1 %v109_v23 }
  0x8b   :  { %v175_v62 = vpop.f32.mrf.mxu0 }
  0x8c   :  { %v63_v24 = vpop.f32.mrf.mxu3 }
  0x8d   :  { %v64_v26 = vadd.f32 %v946_v22, %v63_v24  ;;  %v1066_v24 = vmov 0  }
  0x8e   :  { %943 = vset.pattern.permute.xlu0 %v1066_v24  ;;  %944 = vset.pattern.permute.xlu1 %v1066_v24 }
  0x8f   :  { %v876_v28 = vmul.f32 -1.442695, %v64_v26  ;;  %945 = vset.pattern.permute.xlu2 %v1066_v24  ;;  %326 = vperm.xlu0 %943, %v320_v25  }
  0x91   :  { %950 = vpow2.f32 %v876_v28 }
  0x92   :  { %v178_v3 = vpop.f32.mrf.mxu2 }
  0x94   :  { %v66_v29 = vpop.f32.mrf.mxu3 }
  0x95   :  { %v67_v30 = vadd.f32 %v946_v22, %v66_v29  ;;  %v321_v29 = vld [vmem:[%s1571_s6 + $0x8] sm:$0xff] }
  0x97   :  { %v951_v32 = vpop.eup %950  ;;  %v877_v33 = vmul.f32 -1.442695, %v67_v30  ;;  %331 = vperm.xlu0 %943, %v321_v29  }
  0x98   :  { %v75_v34 = vadd.f32 1.0, %v951_v32  ;;  %v322_v32 = vld [vmem:[%s1571_s6 + $0x10] sm:$0xff] }
  0x99   :  { %952 = vpow2.f32 %v877_v33  ;;  %336 = vperm.xlu1 %944, %v322_v32   ;;  %v316_v33 = vld [vmem:[%s1569_s4 + $0xc8] sm:$0xff] }
  0x9a   :  { %954 = vrcp.f32 %v75_v34  ;;  %v88_v40 = vand.u32 2147483648, %v75_v34  ;;  %v86_v42 = vand.u32 2147483647, %v75_v34  ;;  %vm82_vm3 = vweird.f32 %v75_v34 }
  0x9c   :  { %v89_v45 = vor.u32 1.1754944e-38, %v88_v40  ;;  %vm87_vm5 = vcmp.eq.f32.partialorder %v86_v42, 8.507059e+37  ;;  %v319_v40 = vld [vmem:[%s1569_s4 + $0xe0] sm:$0xff]  ;;  %v436_v42 = vlaneseq }
  0x9f   :  { %v953_v35 = vpop.eup %952 }
  0xa0   :  { %v955_v36 = vpop.eup %954  ;;  %v76_v37 = vadd.f32 1.0, %v953_v35  ;;  %v323_v35 = vld [vmem:[%s1571_s6 + $0x18] sm:$0xff] }
  0xa1   :  { %v78_v38 = vmul.f32 %v955_v36, %v75_v34  ;;  %vm83_vm2 = vweird.f32 %v955_v36  ;;  %v391_v34 = vld [vmem:[%s1569_s4 + $0xe8] sm:$0xff]  ;;  %341 = vperm.xlu1 %944, %v323_v35  }
  0xa2   :  { %956 = vrcp.f32 %v76_v37  ;;  %vm84_vm4 = vmor %vm82_vm3, %vm83_vm2  ;;  %v103_v51 = vand.u32 2147483648, %v76_v37  ;;  %v101_v53 = vand.u32 2147483647, %v76_v37  ;;  %vm97_vm7 = vweird.f32 %v76_v37 }
  0xa3   :  { %v79_v39 = vsub.f32 1.0, %v78_v38  ;;  %v318_v38 = vld [vmem:[%s1569_s4 + $0xd8] sm:$0xff] }
  0xa4   :  { %v104_v55 = vor.u32 1.1754944e-38, %v103_v51  ;;  %vm102_vm9 = vcmp.eq.f32.partialorder %v101_v53, 8.507059e+37 }
  0xa5   :  { %v80_v41 = vmul.f32 %v955_v36, %v79_v39  ;;  %v393_v39 = vld [vmem:[%s1569_s4 + $0xf8] sm:$0xff] }
  0xa7   :  { %v81_v43 = vadd.f32 %v955_v36, %v80_v41  ;;  %v394_v41 = vld [vmem:[%s1569_s4 + $0x100] sm:$0xff] }
  0xa8   :  { %v957_v44 = vpop.eup %956 }
  0xa9   :  { %v85_v46 = vsel %vm84_vm4, %v955_v36, %v81_v43  ;;  %v93_v47 = vmul.f32 %v957_v44, %v76_v37  ;;  %vm98_vm6 = vweird.f32 %v957_v44  ;;  %v317_v36 = vld [vmem:[%s1569_s4 + $0xd0] sm:$0xff]  ;;  %v439_v43 = vld [vmem:[%s1568_s3] ss:$2 sm:$0x3] }
  0xaa   :  { %v90_v48 = vsel %vm87_vm5, %v89_v45, %v85_v46  ;;  %vm99_vm8 = vmor %vm97_vm7, %vm98_vm6  ;;  %v392_v37 = vld [vmem:[%s1569_s4 + $0xf0] sm:$0xff]  ;;  %v440_v45 = vperm.slane %v439_v43, 0  ;;  %v441_v51 = vperm.slane %v439_v43, 1 }
  0xab   :  { %v107_v49 = vmul.f32 %v90_v48, %v64_v26  ;;  %v94_v50 = vsub.f32 1.0, %v93_v47  ;;  %v949_v26 = vld [vmem:[%s1569_s4 + $0x10b] ss:$0 sm:$0xff]  ;;  %v1067_v47 = vmov 1.0  }
  0xac   :  { %v900_v48 = vld [vmem:[%s1568_s3 + $0x1] ss:$2 sm:$0x3] }
  0xad   :  { %141 = vmatmul.f32.vlgmr.msra.gmra.mxu1 %v107_v49  ;;  %v95_v52 = vmul.f32 %v957_v44, %v94_v50  ;;  %v452_v49 = vperm.slane %v900_v48, 0  ;;  %v453_v50 = vperm.slane %v900_v48, 1 }
  0xaf   :  { %v96_v54 = vadd.f32 %v957_v44, %v95_v52 }
  0xb1   :  { %v100_v56 = vsel %vm99_vm8, %v957_v44, %v96_v54  ;;  %v437_v44 = vshrl.u32 %v436_v42, 7 }
  0xb2   :  { %v105_v57 = vsel %vm102_vm9, %v104_v55, %v100_v56 }
  0xb3   :  { %v108_v58 = vmul.f32 %v105_v57, %v67_v30  ;;  %v438_v46 = vadd.s32 8, %v437_v44  ;;  %vm454_vm15 = vcmp.eq.s32.totalorder %v452_v49, %v437_v44  ;;  %vm455_vm1 = vcmp.eq.s32.totalorder %v453_v50, %v437_v44 }
  0xb4   :  { %vm442_vm2 = vcmp.eq.s32.totalorder %v440_v45, %v437_v44  ;;  %vm443_vm3 = vcmp.eq.s32.totalorder %v441_v51, %v437_v44 }
  0xb5   :  { %144 = vmatmul.f32.gmra.mxu1 %v108_v58  ;;  %vm444_vm11 = vcmp.eq.s32.totalorder %v440_v45, %v438_v46  ;;  %vm456_vm12 = vcmp.eq.s32.totalorder %v452_v49, %v438_v46  ;;  %vm457_vm13 = vcmp.eq.s32.totalorder %v453_v50, %v438_v46  ;;  %vm445_vm14 = vcmp.eq.s32.totalorder %v441_v51, %v438_v46 }
  0xb6   :  { %907 = vmatpush.msk.msrb.mxu1 %vm457_vm13, %v1067_v47 }
  0xb8   :  { %908 = vmatpush.msk.msrb.mxu1 %vm455_vm1, %v1067_v47 }
 0x101   :  { %v327_v53 = vpop.permute.xlu0 %326 }
 0x109   :  { %v332_v57 = vpop.permute.xlu0 %331 }
 0x10b   :  { %v337_v61 = vpop.permute.xlu1 %336 }
 0x12a   :  { %v142_v0 = vpop.f32.mrf.mxu1 }
 0x12b   :  { %v176_v1 = vadd.f32 %v175_v62, %v142_v0 }
 0x12d   :  { %v183_v2 = vadd.f32 %v947_v63, %v176_v1  ;;  %v342_v1 = vpop.permute.xlu1 %341 }
 0x12f   :  { %185 = vst.msk [vmem:[#allocation2] sm:$0xff] %vm1575_vm0, %v183_v2  ;;  %880 = vmatmul.msk.f32.vlgmr.msrb.gmra.mxu3 %vm1575_vm0, %v183_v2 }
 0x132   :  { %v145_v4 = vpop.f32.mrf.mxu1 }
 0x133   :  { %v179_v5 = vadd.f32 %v178_v3, %v145_v4 }
 0x135   :  { %v184_v6 = vadd.f32 %v947_v63, %v179_v5 }
 0x137   :  { %186 = vst.msk [vmem:[#allocation2 + $0x8] sm:$0xff] %vm1575_vm0, %v184_v6  ;;  %881 = vmatmul.msk.f32.gmra.mxu3 %vm1575_vm0, %v184_v6 }
 0x1b2   :  { %v216_v8 = vpop.f32.mrf.mxu3 }
 0x1ba   :  { %v219_v9 = vpop.f32.mrf.mxu3 }
 0x1bb   :  { %245 = vmatpush.msrb.mxu2 %v219_v9 }
 0x1bd   :  { %246 = vmatpush.msrb.mxu2 %v216_v8 }
 0x1be   :  { %882 = vmatmul.msk.f32.vlgmr.msrb.gmra.mxu2 %vm224_vm10, %v187_v10 }
 0x1c6   :  { %883 = vmatmul.msk.f32.gmra.mxu2 %vm224_vm10, %v188_v11 }
 0x241   :  { %v248_v16 = vpop.f32.mrf.mxu2 }
 0x242   :  { %v249_v17 = vadd.f32 %v948_v15, %v248_v16 }
 0x244   :  { %v254_v18 = vmax.f32 %v249_v17, 0.0 }
 0x246   :  { %884 = vmatmul.msk.f32.vlgmr.msrb.gmra.mxu0 %vm1575_vm0, %v254_v18 }
 0x249   :  { %v251_v19 = vpop.f32.mrf.mxu2 }
 0x24a   :  { %v252_v20 = vadd.f32 %v948_v15, %v251_v19 }
 0x24c   :  { %v255_v21 = vmax.f32 %v252_v20, 0.0 }
 0x24e   :  { %885 = vmatmul.msk.f32.gmra.mxu0 %vm1575_vm0, %v255_v21 }
 0x2c3   :  { %v283_v22 = vpop.f32.mrf.mxu0 }
 0x2cb   :  { %v286_v23 = vpop.f32.mrf.mxu0 }
 0x2cc   :  { %305 = vmatpush.msra.mxu3 %v286_v23 }
 0x2ce   :  { %306 = vmatpush.msra.mxu3 %v283_v22 }
 0x2cf   :  { %886 = vmatmul.msk.f32.vlgmr.msra.gmra.mxu3 %vm224_vm10, %v187_v10 }
 0x2d0   :  { %901 = vmatpush.msk.msrb.mxu3 %vm456_vm12, %v1067_v47 }
 0x2d2   :  { %902 = vmatpush.msk.msrb.mxu3 %vm454_vm15, %v1067_v47 }
 0x2d7   :  { %887 = vmatmul.msk.f32.gmra.mxu3 %vm224_vm10, %v188_v11 }
 0x352   :  { %v308_v27 = vpop.f32.mrf.mxu3 }
 0x353   :  { %v309_v28 = vadd.f32 %v949_v26, %v308_v27 }
 0x355   :  { %314 = vst.msk [vmem:[#allocation4] sm:$0xff] %vm1575_vm0, %v309_v28 }
 0x35a   :  { %v311_v30 = vpop.f32.mrf.mxu3 }
 0x35b   :  { %v312_v31 = vadd.f32 %v949_v26, %v311_v30 }
 0x35d   :  { %315 = vst.msk [vmem:[#allocation4 + $0x8] sm:$0xff] %vm1575_vm0, %v312_v31  ;;  %888 = vmatpush.xpose.msk.msra.mxu2 %vm1575_vm0, %v312_v31  ;;  %894 = vmatpush.xpose.msk.msra.mxu0 %vm1575_vm0, %v312_v31 }
 0x35e   :  { %848 = dma.vmem_to_hbm [thread:$0]  %s841_s25, 256, %s843_s23, [#allocation5], %s1069_s26, %s1069_s26, %s1070_s27  }
 0x361   :  { %889 = vmatpush.xpose.msk.msra.mxu2 %vm1575_vm0, %v309_v28  ;;  %895 = vmatpush.xpose.msk.msra.mxu0 %vm1575_vm0, %v309_v28 }
 0x364   :  { %890 = vmatmul.msk.f32.vlgmr.msra.gmra.mxu2 %vm1575_vm0, %v316_v33  ;;  %896 = vmatmul.msk.f32.vlgmr.msra.gmra.mxu0 %vm1575_vm0, %v391_v34 }
 0x365   :  { %913 = vmatpush.msk.msrb.mxu2 %vm444_vm11, %v1067_v47  ;;  %919 = vmatpush.msk.msrb.mxu0 %vm445_vm14, %v1067_v47 }
 0x367   :  { %914 = vmatpush.msk.msrb.mxu2 %vm442_vm2, %v1067_v47  ;;  %920 = vmatpush.msk.msrb.mxu0 %vm443_vm3, %v1067_v47 }
 0x36c   :  { %891 = vmatmul.msk.f32.gmra.mxu2 %vm1575_vm0, %v317_v36  ;;  %897 = vmatmul.msk.f32.gmra.mxu0 %vm1575_vm0, %v392_v37 }
 0x374   :  { %892 = vmatmul.msk.f32.gmra.mxu2 %vm1575_vm0, %v318_v38  ;;  %898 = vmatmul.msk.f32.gmra.mxu0 %vm1575_vm0, %v393_v39 }
 0x37c   :  { %893 = vmatmul.msk.f32.gmra.mxu2 %vm1575_vm0, %v319_v40  ;;  %899 = vmatmul.msk.f32.gmra.mxu0 %vm1575_vm0, %v394_v41 }
 0x3e1   :  { %v424_v52 = vpop.f32.mrf.mxu0 }
 0x3e2   :  { %903 = vmatmul.msk.f32.vlgmr.msrb.gmra.mxu3 %vm224_vm10, %v424_v52  ;;  %909 = vmatmul.msk.f32.vlgmr.msrb.gmra.mxu1 %vm224_vm10, %v424_v52 }
 0x3e7   :  { %v379_v54 = vpop.f32.mrf.mxu2 }
 0x3e8   :  { %v380_v55 = vadd.f32 %v379_v54, %v327_v53 }
 0x3e9   :  { %v427_v56 = vpop.f32.mrf.mxu0 }
 0x3ea   :  { %915 = vmatmul.msk.f32.vlgmr.msrb.gmra.mxu2 %vm224_vm10, %v380_v55  ;;  %921 = vmatmul.msk.f32.vlgmr.msrb.gmra.mxu0 %vm224_vm10, %v380_v55 }
 0x3eb   :  { %904 = vmatmul.msk.f32.gmra.mxu3 %vm224_vm10, %v427_v56  ;;  %910 = vmatmul.msk.f32.gmra.mxu1 %vm224_vm10, %v427_v56 }
 0x3ef   :  { %v382_v58 = vpop.f32.mrf.mxu2 }
 0x3f0   :  { %v383_v59 = vadd.f32 %v382_v58, %v332_v57 }
 0x3f1   :  { %v430_v60 = vpop.f32.mrf.mxu0 }
 0x3f2   :  { %916 = vmatmul.msk.f32.gmra.mxu2 %vm224_vm10, %v383_v59  ;;  %922 = vmatmul.msk.f32.gmra.mxu0 %vm224_vm10, %v383_v59 }
 0x3f3   :  { %905 = vmatmul.msk.f32.gmra.mxu3 %vm224_vm10, %v430_v60  ;;  %911 = vmatmul.msk.f32.gmra.mxu1 %vm224_vm10, %v430_v60 }
 0x3f7   :  { %v385_v62 = vpop.f32.mrf.mxu2 }
 0x3f8   :  { %v386_v63 = vadd.f32 %v385_v62, %v337_v61  ;;  %v763_v61 = vld [vmem:[%s1571_s6 + $0x20] sm:$0x1] }
 0x3f9   :  { %v433_v0 = vpop.f32.mrf.mxu0  ;;  %766 = vperm.xlu2 %945, %v763_v61  }
 0x3fa   :  { %917 = vmatmul.msk.f32.gmra.mxu2 %vm224_vm10, %v386_v63  ;;  %923 = vmatmul.msk.f32.gmra.mxu0 %vm224_vm10, %v386_v63 }
 0x3fb   :  { %906 = vmatmul.msk.f32.gmra.mxu3 %vm224_vm10, %v433_v0  ;;  %912 = vmatmul.msk.f32.gmra.mxu1 %vm224_vm10, %v433_v0 }
 0x3ff   :  { %v388_v2 = vpop.f32.mrf.mxu2 }
 0x400   :  { %v389_v3 = vadd.f32 %v388_v2, %v342_v1 }
 0x402   :  { %918 = vmatmul.msk.f32.gmra.mxu2 %vm224_vm10, %v389_v3  ;;  %924 = vmatmul.msk.f32.gmra.mxu0 %vm224_vm10, %v389_v3 }
 0x45f   :  { %v520_v4 = vpop.f32.mrf.mxu1 }
 0x465   :  { %v491_v6 = vpop.f32.mrf.mxu3 }
 0x467   :  { %v590_v5 = vpop.f32.mrf.mxu0 }
 0x468   :  { %v523_v7 = vpop.f32.mrf.mxu1  ;;  %v1325_v8 = vadd.f32 %v590_v5, %v520_v4 }
 0x46a   :  { %v926_v11 = vmul.f32 -1.442695, %v1325_v8 }
 0x46c   :  { %958 = vpow2.f32 %v926_v11 }
 0x46d   :  { %v561_v9 = vpop.f32.mrf.mxu2 }
 0x46e   :  { %v494_v13 = vpop.f32.mrf.mxu3  ;;  %v1330_v14 = vadd.f32 %v561_v9, %v491_v6 }
 0x46f   :  { %v593_v10 = vpop.f32.mrf.mxu0 }
 0x470   :  { %v1328_v12 = vadd.f32 %v593_v10, %v523_v7  ;;  %v526_v16 = vpop.f32.mrf.mxu1  ;;  %v925_v18 = vmul.f32 -1.442695, %v1330_v14 }
 0x472   :  { %v928_v15 = vmul.f32 -1.442695, %v1328_v12  ;;  %v959_v23 = vpop.eup %958 }
 0x473   :  { %v1340_v27 = vadd.f32 1.0, %v959_v23 }
 0x474   :  { %960 = vpow2.f32 %v928_v15 }
 0x475   :  { %v564_v17 = vpop.f32.mrf.mxu2  ;;  %962 = vpow2.f32 %v925_v18  ;;  %v660_v56 = vand.u32 2147483648, %v1340_v27  ;;  %v658_v1 = vand.u32 2147483647, %v1340_v27  ;;  %vm654_vm6 = vweird.f32 %v1340_v27 }
 0x476   :  { %v1334_v19 = vadd.f32 %v564_v17, %v494_v13  ;;  %v497_v26 = vpop.f32.mrf.mxu3 }
 0x477   :  { %v596_v20 = vpop.f32.mrf.mxu0  ;;  %v1393_v2 = vor.u32 1.1754944e-38, %v660_v56  ;;  %vm1454_vm1 = vcmp.eq.f32.partialorder %v658_v1, 8.507059e+37 }
 0x478   :  { %v1336_v21 = vadd.f32 %v596_v20, %v526_v16  ;;  %v927_v22 = vmul.f32 -1.442695, %v1334_v19  ;;  %v529_v29 = vpop.f32.mrf.mxu1 }
 0x47a   :  { %v930_v24 = vmul.f32 -1.442695, %v1336_v21  ;;  %v961_v25 = vpop.eup %960 }
 0x47b   :  { %v1342_v30 = vadd.f32 1.0, %v961_v25  ;;  %v963_v33 = vpop.eup %962 }
 0x47c   :  { %964 = vpow2.f32 %v930_v24  ;;  %v1351_v38 = vadd.f32 1.0, %v963_v33 }
 0x47d   :  { %966 = vpow2.f32 %v927_v22  ;;  %v567_v28 = vpop.f32.mrf.mxu2  ;;  %v690_v3 = vand.u32 2147483648, %v1342_v30  ;;  %vm684_vm5 = vweird.f32 %v1342_v30  ;;  %v688_v20 = vand.u32 2147483647, %v1342_v30 }
 0x47e   :  { %v1344_v31 = vadd.f32 %v567_v28, %v497_v26  ;;  %968 = vrcp.f32 %v1340_v27  ;;  %v500_v41 = vpop.f32.mrf.mxu3  ;;  %v643_v13 = vand.u32 2147483647, %v1351_v38  ;;  %v645_v15 = vand.u32 2147483648, %v1351_v38 }
 0x47f   :  { %v599_v32 = vpop.f32.mrf.mxu0  ;;  %970 = vrcp.f32 %v1342_v30  ;;  %v1414_v22 = vor.u32 1.1754944e-38, %v690_v3  ;;  %vm1441_vm14 = vcmp.eq.f32.partialorder %v688_v20, 8.507059e+37 }
 0x480   :  { %v1346_v34 = vadd.f32 %v599_v32, %v529_v29  ;;  %v929_v35 = vmul.f32 -1.442695, %v1344_v31 }
 0x482   :  { %v965_v36 = vpop.eup %964  ;;  %972 = vpow2.f32 %v929_v35  ;;  %v932_v40 = vmul.f32 -1.442695, %v1346_v34 }
 0x483   :  { %v967_v37 = vpop.eup %966  ;;  %v1353_v39 = vadd.f32 1.0, %v965_v36 }
 0x484   :  { %v1356_v44 = vadd.f32 1.0, %v967_v37  ;;  %v1359_v45 = vpop.eup %968 }
 0x485   :  { %v570_v43 = vpop.f32.mrf.mxu2  ;;  %974 = vrcp.f32 %v1353_v39  ;;  %v1362_v46 = vpop.eup %970  ;;  %v650_v50 = vmul.f32 %v1359_v45, %v1340_v27  ;;  %vm655_vm4 = vweird.f32 %v1359_v45  ;;  %v718_v17 = vand.u32 2147483647, %v1353_v39 }
 0x486   :  { %976 = vrcp.f32 %v1351_v38  ;;  %v1364_v47 = vadd.f32 %v570_v43, %v500_v41  ;;  %v680_v51 = vmul.f32 %v1362_v46, %v1342_v30  ;;  %v720_v18 = vand.u32 2147483648, %v1353_v39  ;;  %vm1481_vm2 = vmor %vm654_vm6, %vm655_vm4 }
 0x487   :  { %978 = vpow2.f32 %v932_v40  ;;  %v651_v58 = vsub.f32 1.0, %v650_v50  ;;  %vm685_vm7 = vweird.f32 %v1362_v46  ;;  %v673_v33 = vand.u32 2147483647, %v1356_v44 }
 0x488   :  { %v973_v48 = vpop.eup %972  ;;  %980 = vrcp.f32 %v1356_v44  ;;  %v931_v49 = vmul.f32 -1.442695, %v1364_v47  ;;  %v681_v59 = vsub.f32 1.0, %v680_v51  ;;  %v675_v35 = vand.u32 2147483648, %v1356_v44  ;;  %vm1437_vm13 = vmor %vm684_vm5, %vm685_vm7 }
 0x489   :  { %v1372_v52 = vadd.f32 1.0, %v973_v48  ;;  %v652_v6 = vmul.f32 %v1359_v45, %v651_v58  ;;  %vm669_vm8 = vweird.f32 %v1356_v44  ;;  %vm714_vm10 = vweird.f32 %v1353_v39 }
 0x48a   :  { %982 = vpow2.f32 %v931_v49  ;;  %v682_v7 = vmul.f32 %v1362_v46, %v681_v59  ;;  %vm1430_vm11 = vcmp.eq.f32.partialorder %v718_v17, 8.507059e+37  ;;  %v721_v40 = vor.u32 1.1754944e-38, %v720_v18 }
 0x48b   :  { %v1374_v53 = vpop.eup %974  ;;  %984 = vrcp.f32 %v1372_v52  ;;  %v1418_v26 = vadd.f32 %v1359_v45, %v652_v6  ;;  %vm699_vm3 = vweird.f32 %v1372_v52  ;;  %v646_v41 = vor.u32 1.1754944e-38, %v645_v15 }
 0x48c   :  { %v1376_v54 = vpop.eup %976  ;;  %v710_v57 = vmul.f32 %v1374_v53, %v1353_v39  ;;  %v683_v28 = vadd.f32 %v1362_v46, %v682_v7  ;;  %vm715_vm15 = vweird.f32 %v1374_v53 }
 0x48d   :  { %v979_v55 = vpop.eup %978  ;;  %v635_v63 = vmul.f32 %v1376_v54, %v1351_v38  ;;  %vm640_vm12 = vweird.f32 %v1376_v54  ;;  %vm1463_vm7 = vmor %vm714_vm10, %vm715_vm15  ;;  %v657_v17 = vsel %vm1481_vm2, %v1359_v45, %v1418_v26 }
 0x48e   :  { %v1382_v60 = vadd.f32 1.0, %v979_v55  ;;  %v1387_v62 = vpop.eup %980  ;;  %v711_v4 = vsub.f32 1.0, %v710_v57  ;;  %v687_v30 = vsel %vm1437_vm13, %v1362_v46, %v683_v28 }
 0x48f   :  { %v665_v9 = vmul.f32 %v1387_v62, %v1356_v44  ;;  %v636_v11 = vsub.f32 1.0, %v635_v63  ;;  %vm670_vm9 = vweird.f32 %v1387_v62  ;;  %v703_v63 = vand.u32 2147483647, %v1372_v52 }
 0x490   :  { %986 = vrcp.f32 %v1382_v60  ;;  %v983_v0 = vpop.eup %982  ;;  %v712_v23 = vmul.f32 %v1374_v53, %v711_v4  ;;  %v748_v56 = vand.u32 2147483647, %v1382_v60  ;;  %v750_v57 = vand.u32 2147483648, %v1382_v60  ;;  %vm1505_vm4 = vmor %vm669_vm8, %vm670_vm9 }
 0x491   :  { %v1396_v5 = vpop.eup %984  ;;  %v1402_v10 = vadd.f32 1.0, %v983_v0  ;;  %v666_v29 = vsub.f32 1.0, %v665_v9  ;;  %v637_v32 = vmul.f32 %v1376_v54, %v636_v11  ;;  %v705_v0 = vand.u32 2147483648, %v1372_v52 }
 0x492   :  { %v695_v16 = vmul.f32 %v1396_v5, %v1372_v52  ;;  %v713_v48 = vadd.f32 %v1374_v53, %v712_v23  ;;  %vm700_vm13 = vweird.f32 %v1396_v5  ;;  %vm744_vm0 = vweird.f32 %v1382_v60 }
 0x493   :  { %988 = vrcp.f32 %v1402_v10  ;;  %v667_v55 = vmul.f32 %v1387_v62, %v666_v29  ;;  %vm749_vm15 = vcmp.eq.f32.partialorder %v748_v56, 8.507059e+37  ;;  %v751_v7 = vor.u32 1.1754944e-38, %v750_v57 }
 0x494   :  { %v696_v24 = vsub.f32 1.0, %v695_v16  ;;  %v717_v1 = vsel %vm1463_vm7, %v1374_v53, %v713_v48  ;;  %v735_v9 = vand.u32 2147483648, %v1402_v10  ;;  %v733_v16 = vand.u32 2147483647, %v1402_v10 }
 0x495   :  { %v668_v6 = vadd.f32 %v1387_v62, %v667_v55  ;;  %v638_v18 = vadd.f32 %v1376_v54, %v637_v32  ;;  %v722_v20 = vsel %vm1430_vm11, %v721_v40, %v717_v1  ;;  %vm729_vm6 = vweird.f32 %v1402_v10 }
 0x496   :  { %v987_v25 = vpop.eup %986  ;;  %v697_v49 = vmul.f32 %v1396_v5, %v696_v24  ;;  %v692_v26 = vsel %vm1441_vm14, %v1414_v22, %v687_v30  ;;  %vm704_vm11 = vcmp.eq.f32.partialorder %v703_v63, 8.507059e+37  ;;  %v706_v28 = vor.u32 1.1754944e-38, %v705_v0 }
 0x497   :  { %v740_v36 = vmul.f32 %v987_v25, %v1382_v60  ;;  %vm745_vm5 = vweird.f32 %v987_v25  ;;  %v736_v29 = vor.u32 1.1754944e-38, %v735_v9  ;;  %v672_v32 = vsel %vm1505_vm4, %v1387_v62, %v668_v6 }
 0x498   :  { %v698_v3 = vadd.f32 %v1396_v5, %v697_v49  ;;  %vm746_vm10 = vmor %vm744_vm0, %vm745_vm5  ;;  %vm734_vm9 = vcmp.eq.f32.partialorder %v733_v16, 8.507059e+37  ;;  %vm1592_vm14 = vweird.f32 %v1351_v38  ;;  %v676_v62 = vor.u32 1.1754944e-38, %v675_v35 }
 0x499   :  { %v741_v50 = vsub.f32 1.0, %v740_v36  ;;  %v989_v51 = vpop.eup %988  ;;  %vm1497_vm0 = vmor %vm699_vm3, %vm700_vm13  ;;  %v757_v40 = vmul.f32 %v692_v26, %v1328_v12  ;;  %vm1595_vm3 = vcmask 261120   ;;  %vm815_vm13 = vcmask 1040384  }
 0x49a   :  { %v725_v61 = vmul.f32 %v989_v51, %v1402_v10  ;;  %vm730_vm7 = vweird.f32 %v989_v51  ;;  %v702_v24 = vsel %vm1497_vm0, %v1396_v5, %v698_v3  ;;  %v759_v5 = vmul.f32 %v722_v20, %v1336_v21  ;;  %vm1529_vm2 = vmor %vm1592_vm14, %vm640_vm12 }
 0x49b   :  { %v742_v59 = vmul.f32 %v987_v25, %v741_v50  ;;  %vm731_vm8 = vmor %vm729_vm6, %vm730_vm7  ;;  %v707_v22 = vsel %vm704_vm11, %v706_v28, %v702_v24  ;;  %v642_v37 = vsel %vm1529_vm2, %v1376_v54, %v638_v18  ;;  %vm644_vm12 = vcmp.eq.f32.partialorder %v643_v13, 8.507059e+37 }
 0x49c   :  { %v726_v39 = vsub.f32 1.0, %v725_v61  ;;  %v758_v48 = vmul.f32 %v707_v22, %v1344_v31  ;;  %v647_v12 = vsel %vm644_vm12, %v646_v41, %v642_v37  ;;  %vm1596_vm5 = vmmov %vm1595_vm3 }
 0x49d   :  { %v743_v4 = vadd.f32 %v987_v25, %v742_v59 }
 0x49e   :  { %v727_v11 = vmul.f32 %v989_v51, %v726_v39 }
 0x49f   :  { %v747_v53 = vsel %vm746_vm10, %v987_v25, %v743_v4  ;;  %vm820_vm10 = vcmp.lt.s32.totalorder %v436_v42, 256 }
 0x4a0   :  { %v752_v23 = vsel %vm749_vm15, %v751_v7, %v747_v53  ;;  %v728_v52 = vadd.f32 %v989_v51, %v727_v11 }
 0x4a1   :  { %v761_v25 = vmul.f32 %v752_v23, %v1346_v34  ;;  %v662_v34 = vsel %vm1454_vm1, %v1393_v2, %v657_v17  ;;  %vm674_vm1 = vcmp.eq.f32.partialorder %v673_v33, 8.507059e+37 }
 0x4a2   :  { %v732_v36 = vsel %vm731_vm8, %v989_v51, %v728_v52  ;;  %v677_v43 = vsel %vm674_vm1, %v676_v62, %v672_v32  ;;  %v755_v35 = vmul.f32 %v662_v34, %v1325_v8  ;;  %v754_v8 = vmul.f32 %v647_v12, %v1330_v14  ;;  %v767_v14 = vpop.permute.xlu2 %766 }
 0x4a3   :  { %804 = vmatpush.msra.mxu1 %v761_v25  ;;  %v737_v21 = vsel %vm734_vm9, %v736_v29, %v732_v36  ;;  %v756_v44 = vmul.f32 %v677_v43, %v1334_v19 }
 0x4a4   :  { %v760_v2 = vmul.f32 %v737_v21, %v1364_v47  ;;  %v762_v47 = vld [vmem:[%s1569_s4 + $0x108] sm:$0x1]  ;;  %s1071_s4 = smov [#allocation2]  }
 0x4a5   :  { %805 = vmatpush.msra.mxu1 %v759_v5  ;;  %s827_s28 = sshll.u32 %s1071_s4, 4  ;;  %s828_s28 = int_to_ptr.vmem [resolvable:$true] %s827_s28 }
 0x4a6   :  { %784 = vmatpush.msra.mxu3 %v760_v2  ;;  %835 = dma.vmem_to_hbm [thread:$0]  %s828_s28, 256, %s830_s30, [#allocation3], %s1069_s26, %s1069_s26, %s1070_s27  }
 0x4a7   :  { %806 = vmatpush.msra.mxu1 %v757_v40 }
 0x4a8   :  { %785 = vmatpush.msra.mxu3 %v758_v48 }
 0x4a9   :  { %807 = vmatpush.msra.mxu1 %v755_v35 }
 0x4aa   :  { %934 = vmatmul.msk.f32.vlgmr.msra.gmra.mxu1 %vm1595_vm3, %v762_v47  ;;  %786 = vmatpush.msra.mxu3 %v756_v44 }
 0x4ac   :  { %787 = vmatpush.msra.mxu3 %v754_v8 }
 0x4ad   :  { %933 = vmatmul.msk.f32.vlgmr.msra.gmra.mxu3 %vm1596_vm5, %v762_v47 }
 0x527   :  { %v809_v19 = vpop.f32.mrf.mxu1 }
 0x528   :  { %v810_v31 = vadd.f32 %v809_v19, %v767_v14 }
 0x52a   :  { %v814_v38 = vrot.slane %v810_v31, 7 }
 0x530   :  { %v789_v54 = vpop.f32.mrf.mxu3 }
 0x531   :  { %v790_v13 = vadd.f32 %v789_v54, %v767_v14 }
 0x533   :  { %v816_v15 = vsel %vm815_vm13, %v790_v13, %v814_v38 }
 0x534   :  { %822 = vst.msk [vmem:[#allocation6] sm:$0x3] %vm820_vm10, %v816_v15 }
 0x535   :  { %859 = dma.vmem_to_hbm [thread:$0]  %s855_s10, 32, %s857_s13, [#allocation5]  }
 0x536   :  { %1062 = dma.done.wait [#allocation3], 256  }
 0x537   :  { %1063 = vsyncadd [#allocation3], 4294967040 }
 0x538   :  { %1064 = dma.done.wait [#allocation5], 288  }
 0x539   :  { %1065 = vsyncadd [#allocation5], 4294967008 }
 0x53a   :  { %872 = vsyncpa [#allocation3], 1 }
 0x53b   :  { %873 = vsyncpa [#allocation5], 1 }

</bundles_post_ra>
